<compile_context>
chip_gen: v6e
topology: v6e:2x2x1
jax: 0.10.0
libtpu: 0.0.40
codegen_flags: <defaults>
</compile_context>

<pallas_src>
from functools import partial

import jax
import jax.numpy as jnp
from jax import lax
from jax.experimental import pallas as pl
from jax.experimental.pallas import tpu as pltpu

LN_EPS = 1e-5  # nn.LayerNorm default eps


def _layer_norm(x, gamma, beta):
    # Fused statistics: one pass for mean and mean-of-squares (halves XLU reductions).
    mu = jnp.mean(x, axis=-1, keepdims=True)
    ms = jnp.mean(x * x, axis=-1, keepdims=True)
    var = ms - mu * mu
    return (x - mu) * lax.rsqrt(var + LN_EPS) * gamma + beta


def _gelu(x, use_tanh):
    if use_tanh:
        # tanh approximation -> runs on the EUP slot, frees VALU bundles during the MLP.
        c = 0.7978845608028654  # sqrt(2/pi)
        return 0.5 * x * (1.0 + jnp.tanh(c * (x + 0.044715 * x * x * x)))
    # exact erf formulation (nn.GELU default) for the f32 parity path.
    return 0.5 * x * (1.0 + lax.erf(x * 0.7071067811865476))


def block_kernel(x_ref, g1_ref, be1_ref,
                 wqkv_ref, bqkv_ref, wpr_ref, bpr_ref,
                 g2_ref, be2_ref,
                 w1_ref, b1_ref, w2_ref, b2_ref,
                 o_ref,
                 qkv_sc, ctx_sc, x1_sc,
                 *, n_heads, approx_recip, use_tanh_gelu, mlp_chunk):
    Bt, N, D = x_ref.shape
    M = Bt * N
    hd = D // n_heads
    H = w1_ref.shape[1]
    scale = float(hd) ** (-0.5)
    cdt = wqkv_ref.dtype  # MXU input dtype (bf16 or f32)

    # ---- norm1 + QKV: one big (M, D) @ (D, 3D) matmul, f32 accumulation ----
    x = x_ref[...].reshape(M, D).astype(jnp.float32)  # free view when N % 8 == 0
    xn = _layer_norm(x, g1_ref[0], be1_ref[0])
    qkv_sc[...] = (jnp.dot(xn.astype(cdt), wqkv_ref[...],
                           preferred_element_type=jnp.float32) + bqkv_ref[0])

    # ---- attention: per image, assemble all heads into ctx_sc, then one K=D projection ----
    @pl.loop(0, Bt)
    def _attn(b):
        row0 = pl.multiple_of(b * N, N)
        for h in range(n_heads):  # small static loop; per-head values die each iteration
            q = (qkv_sc[pl.ds(row0, N), h * hd:(h + 1) * hd] * scale).astype(cdt)
            k = qkv_sc[pl.ds(row0, N), D + h * hd:D + (h + 1) * hd].astype(cdt)
            v = qkv_sc[pl.ds(row0, N), 2 * D + h * hd:2 * D + (h + 1) * hd].astype(cdt)
            # q @ k^T without materializing a transpose
            s = lax.dot_general(q, k, (((1,), (1,)), ((), ())),
                                preferred_element_type=jnp.float32)      # (N, N)
            s = s - jnp.max(s, axis=-1, keepdims=True)
            e = jnp.exp(s)
            inv = pl.reciprocal(jnp.sum(e, axis=-1, keepdims=True), approx=approx_recip)
            a = (e * inv).astype(cdt)
            ctx_sc[:, h * hd:(h + 1) * hd] = jnp.dot(
                a, v, preferred_element_type=jnp.float32)                # (N, hd)
        # single (N, D) @ (D, D) projection per image -> full MXU reduction depth
        x1_sc[pl.ds(row0, N), :] = jnp.dot(
            ctx_sc[...].astype(cdt), wpr_ref[...], preferred_element_type=jnp.float32)

    # ---- residual 1 (re-read x_ref instead of keeping x live across the attention loop) ----
    x1 = x_ref[...].reshape(M, D).astype(jnp.float32) + x1_sc[...] + bpr_ref[0]
    x1_sc[...] = x1  # park in VMEM for residual 2

    # ---- norm2 + MLP (hidden dim chunked to bound the (M, H) f32 intermediate) ----
    x1n = _layer_norm(x1, g2_ref[0], be2_ref[0]).astype(cdt)
    n_chunks = H // mlp_chunk
    mlp_out = jnp.zeros((M, D), jnp.float32)
    for c in range(n_chunks):
        cs = c * mlp_chunk
        h1 = (jnp.dot(x1n, w1_ref[:, cs:cs + mlp_chunk],
                      preferred_element_type=jnp.float32)
              + b1_ref[0, cs:cs + mlp_chunk])
        h1 = _gelu(h1, use_tanh_gelu)
        mlp_out = mlp_out + jnp.dot(h1.astype(cdt), w2_ref[cs:cs + mlp_chunk, :],
                                    preferred_element_type=jnp.float32)

    out = x1_sc[...] + mlp_out + b2_ref[0]
    o_ref[...] = out.reshape(Bt, N, D).astype(o_ref.dtype)


def _vmem_limit_bytes():
    """Generation-aware VMEM limit with headroom (v7x: ~48 MiB, v5e/v6e: ~96 MiB)."""
    try:
        cap = int(pltpu.get_tpu_info().vmem_capacity_bytes)
    except Exception:
        cap = 128 * 1024 * 1024
    return min((cap * 3) // 4, 100 * 1024 * 1024)


def _pick_batch_tile(B, N, D, H, x_itemsize, w_itemsize, vmem_budget):
    """Largest divisor of B fitting a per-step VMEM budget; prefers grid length >= 2."""
    def usage(bt):
        M = bt * N
        io = 2 * 2 * M * D * x_itemsize                               # x + out, double-buffered
        wts = (D * 3 * D + D * D + D * H + H * D) * w_itemsize + (6 * D + 3 * D + H) * 4
        scr = M * 3 * D * 4 + M * D * 4 + N * D * 4                   # qkv_sc + x1_sc + ctx_sc
        live = M * (D + min(H, 2048)) * 4                             # x1n / h1 chunk / mlp acc
        return io + wts + scr + live

    divs = [d for d in range(1, B + 1) if B % d == 0]
    fitting = [d for d in divs if usage(d) <= vmem_budget]
    if not fitting:
        return 1
    pref = [d for d in fitting if B // d >= 2]  # keep both v7x TensorCores busy
    return max(pref) if pref else max(fitting)


def vit_block(x, params, n_heads, *, batch_tile=None, compute_dtype=jnp.bfloat16,
              approx_recip=None, use_tanh_gelu=None, mlp_chunk=None):
    B, N, D = x.shape
    H = params["w1"].shape[1]
    assert D % n_heads == 0

    cdt = compute_dtype
    if approx_recip is None:
        approx_recip = (cdt != jnp.float32)
    if use_tanh_gelu is None:
        use_tanh_gelu = (cdt != jnp.float32)

    x_itemsize = jnp.dtype(x.dtype).itemsize
    w_itemsize = jnp.dtype(cdt).itemsize

    vmem_limit = _vmem_limit_bytes()
    if batch_tile is None:
        batch_tile = _pick_batch_tile(B, N, D, H, x_itemsize, w_itemsize,
                                      int(vmem_limit * 0.8))
    assert B % batch_tile == 0
    Bt = batch_tile

    if mlp_chunk is None:
        if H <= 2048:
            mlp_chunk = H
        else:
            mlp_chunk = max(d for d in range(1, 1025) if H % d == 0)
    assert H % mlp_chunk == 0

    # bf16 weights -> 2x MXU throughput, half the resident weight VMEM.
    w_qkv = params["w_qkv"].astype(cdt)
    w_proj = params["w_proj"].astype(cdt)
    w1 = params["w1"].astype(cdt)
    w2 = params["w2"].astype(cdt)

    def full(shape):
        nd = len(shape)
        # Grid-invariant operand: single-buffer (no overlap benefit, half the VMEM).
        return pl.BlockSpec(shape, lambda b, _nd=nd: (0,) * _nd,
                            pipeline_mode=pl.Buffered(1))

    grid_spec = pltpu.PrefetchScalarGridSpec(
        num_scalar_prefetch=0,
        grid=(B // Bt,),
        in_specs=[
            pl.BlockSpec((Bt, N, D), lambda b: (b, 0, 0)),   # x: Bt images per grid step
            full((1, D)), full((1, D)),                      # ln1 gamma/beta
            full((D, 3 * D)), full((1, 3 * D)),              # qkv weight/bias
            full((D, D)), full((1, D)),                      # proj weight/bias
            full((1, D)), full((1, D)),                      # ln2 gamma/beta
            full((D, H)), full((1, H)),                      # fc1 weight/bias
            full((H, D)), full((1, D)),                      # fc2 weight/bias
        ],
        out_specs=pl.BlockSpec((Bt, N, D), lambda b: (b, 0, 0)),
        scratch_shapes=[
            pltpu.VMEM((Bt * N, 3 * D), jnp.float32),        # qkv
            pltpu.VMEM((N, D), jnp.float32),                 # per-image context (all heads)
            pltpu.VMEM((Bt * N, D), jnp.float32),            # attn out / x1 residual
        ],
    )

    # Advisory cost estimate so XLA schedules surrounding ops around this fused call.
    flops = (2 * B * N * D * 3 * D            # qkv
             + 4 * B * N * N * D              # scores + context over all heads
             + 2 * B * N * D * D              # proj
             + 4 * B * N * D * H)             # fc1 + fc2
    transcendentals = B * n_heads * N * N + B * N * H
    weight_bytes = (D * 3 * D + D * D + 2 * D * H) * w_itemsize
    bytes_accessed = 2 * B * N * D * x_itemsize + weight_bytes
    cost = pl.CostEstimate(flops=flops, transcendentals=transcendentals,
                           bytes_accessed=bytes_accessed)

    kernel = partial(block_kernel, n_heads=n_heads, approx_recip=approx_recip,
                     use_tanh_gelu=use_tanh_gelu, mlp_chunk=mlp_chunk)

    return pl.pallas_call(
        kernel,
        out_shape=jax.ShapeDtypeStruct((B, N, D), x.dtype),
        grid_spec=grid_spec,
        compiler_params=pltpu.CompilerParams(
            dimension_semantics=("parallel",),
            vmem_limit_bytes=vmem_limit,
        ),
        cost_estimate=cost,
    )(x,
      params["ln1_g"], params["ln1_b"],
      w_qkv, params["b_qkv"], w_proj, params["b_proj"],
      params["ln2_g"], params["ln2_b"],
      w1, params["b1"], w2, params["b2"])


def ref_block(x, p, n_heads):
    """Pure-JAX reference mirroring the PyTorch forward exactly (f32)."""
    def ln(t, g, b):
        mu = t.mean(-1, keepdims=True)
        var = ((t - mu) ** 2).mean(-1, keepdims=True)
        return (t - mu) / jnp.sqrt(var + LN_EPS) * g + b

    B, N, D = x.shape
    hd = D // n_heads
    xn = ln(x, p["ln1_g"][0], p["ln1_b"][0])
    qkv = xn @ p["w_qkv"] + p["b_qkv"][0]
    qkv = qkv.reshape(B, N, 3, n_heads, hd).transpose(2, 0, 3, 1, 4)
    q, k, v = qkv[0], qkv[1], qkv[2]
    dp = jnp.einsum("bhqd,bhkd->bhqk", q, k) * hd ** (-0.5)
    a = jax.nn.softmax(dp, axis=-1)
    wa = jnp.einsum("bhqk,bhkd->bhqd", a, v).transpose(0, 2, 1, 3).reshape(B, N, D)
    x1 = x + (wa @ p["w_proj"] + p["b_proj"][0])
    x1n = ln(x1, p["ln2_g"][0], p["ln2_b"][0])
    h = x1n @ p["w1"] + p["b1"][0]
    h = 0.5 * h * (1.0 + lax.erf(h / jnp.sqrt(2.0)))
    return x1 + (h @ p["w2"] + p["b2"][0])


if __name__ == "__main__":
    B, N, D = 4, 8, 32          # batch, tokens (n_patches + 1), embed dim
    n_heads = 4
    mlp_ratio = 4.0
    Hdim = int(D * mlp_ratio)   # 128

    key = jax.random.PRNGKey(0)
    ks = jax.random.split(key, 10)

    def rnd(k, shape, scale=0.05):
        return (scale * jax.random.normal(k, shape)).astype(jnp.float32)

    params = {
        "ln1_g": jnp.ones((1, D), jnp.float32),
        "ln1_b": jnp.zeros((1, D), jnp.float32),
        "w_qkv": rnd(ks[0], (D, 3 * D)),
        "b_qkv": rnd(ks[1], (1, 3 * D)),
        "w_proj": rnd(ks[2], (D, D)),
        "b_proj": rnd(ks[3], (1, D)),
        "ln2_g": jnp.ones((1, D), jnp.float32),
        "ln2_b": jnp.zeros((1, D), jnp.float32),
        "w1": rnd(ks[4], (D, Hdim)),
        "b1": rnd(ks[5], (1, Hdim)),
        "w2": rnd(ks[6], (Hdim, D)),
        "b2": rnd(ks[7], (1, D)),
    }

    x = jax.random.normal(ks[8], (B, N, D), dtype=jnp.float32)
    ref = ref_block(x, params, n_heads)

    # f32 compute path: faithful to the original semantics (tight tolerance).
    out_f32 = jax.block_until_ready(
        vit_block(x, params, n_heads, batch_tile=2, compute_dtype=jnp.float32))
    assert out_f32.shape == (B, N, D)
    assert jnp.allclose(out_f32, ref, atol=1e-4, rtol=1e-4), \
        float(jnp.max(jnp.abs(out_f32 - ref)))

    # bf16 MXU-input path (default performance config, auto batch_tile / tanh GELU).
    out_bf16 = jax.block_until_ready(
        vit_block(x, params, n_heads, compute_dtype=jnp.bfloat16))
    assert out_bf16.shape == (B, N, D)
    assert jnp.allclose(out_bf16, ref, atol=2e-2, rtol=2e-2), \
        float(jnp.max(jnp.abs(out_bf16 - ref)))

    print("KERNEL_OK")
</pallas_src>

<mosaic_0001>
module attributes {stable_mosaic.version = 11 : i64} {
  func.func @block_kernel(%arg0: i32, %arg1: memref<2x8x32xf32, #tpu.memory_space<vmem>>, %arg2: memref<1x32xf32, #tpu.memory_space<vmem>>, %arg3: memref<1x32xf32, #tpu.memory_space<vmem>>, %arg4: memref<32x96xf32, #tpu.memory_space<vmem>>, %arg5: memref<1x96xf32, #tpu.memory_space<vmem>>, %arg6: memref<32x32xf32, #tpu.memory_space<vmem>>, %arg7: memref<1x32xf32, #tpu.memory_space<vmem>>, %arg8: memref<1x32xf32, #tpu.memory_space<vmem>>, %arg9: memref<1x32xf32, #tpu.memory_space<vmem>>, %arg10: memref<32x128xf32, #tpu.memory_space<vmem>>, %arg11: memref<1x128xf32, #tpu.memory_space<vmem>>, %arg12: memref<128x32xf32, #tpu.memory_space<vmem>>, %arg13: memref<1x32xf32, #tpu.memory_space<vmem>>, %arg14: memref<2x8x32xf32, #tpu.memory_space<vmem>>, %arg15: memref<16x96xf32, #tpu.memory_space<vmem>>, %arg16: memref<8x32xf32, #tpu.memory_space<vmem>>, %arg17: memref<16x32xf32, #tpu.memory_space<vmem>>) attributes {dimension_semantics = [#tpu.dimension_semantics<parallel>], iteration_bounds = array<i64: 2>, scalar_prefetch = 0 : i64, scratch_operands = 3 : i64, tpu.core_type = #tpu.core_type<tc>, window_params = [{transform_indices = @transform_0, window_bounds = array<i64: 2, 8, 32>}, {pipeline_mode = #tpu.pipeline_mode<synchronous>, transform_indices = @transform_1, window_bounds = array<i64: 1, 32>}, {pipeline_mode = #tpu.pipeline_mode<synchronous>, transform_indices = @transform_2, window_bounds = array<i64: 1, 32>}, {pipeline_mode = #tpu.pipeline_mode<synchronous>, transform_indices = @transform_3, window_bounds = array<i64: 32, 96>}, {pipeline_mode = #tpu.pipeline_mode<synchronous>, transform_indices = @transform_4, window_bounds = array<i64: 1, 96>}, {pipeline_mode = #tpu.pipeline_mode<synchronous>, transform_indices = @transform_5, window_bounds = array<i64: 32, 32>}, {pipeline_mode = #tpu.pipeline_mode<synchronous>, transform_indices = @transform_6, window_bounds = array<i64: 1, 32>}, {pipeline_mode = #tpu.pipeline_mode<synchronous>, transform_indices = @transform_7, window_bounds = array<i64: 1, 32>}, {pipeline_mode = #tpu.pipeline_mode<synchronous>, transform_indices = @transform_8, window_bounds = array<i64: 1, 32>}, {pipeline_mode = #tpu.pipeline_mode<synchronous>, transform_indices = @transform_9, window_bounds = array<i64: 32, 128>}, {pipeline_mode = #tpu.pipeline_mode<synchronous>, transform_indices = @transform_10, window_bounds = array<i64: 1, 128>}, {pipeline_mode = #tpu.pipeline_mode<synchronous>, transform_indices = @transform_11, window_bounds = array<i64: 128, 32>}, {pipeline_mode = #tpu.pipeline_mode<synchronous>, transform_indices = @transform_12, window_bounds = array<i64: 1, 32>}, {transform_indices = @transform_13, window_bounds = array<i64: 2, 8, 32>}]} {
    %c0 = arith.constant 0 : index
    %c0_0 = arith.constant 0 : index
    %c0_1 = arith.constant 0 : index
    %0 = vector.load %arg1[%c0, %c0_0, %c0_1] : memref<2x8x32xf32, #tpu.memory_space<vmem>>, vector<2x8x32xf32>
    %1 = vector.shape_cast %0 : vector<2x8x32xf32> to vector<16x32xf32>
    %c0_2 = arith.constant 0 : index
    %c0_3 = arith.constant 0 : index
    %2 = vector.load %arg2[%c0_2, %c0_3] : memref<1x32xf32, #tpu.memory_space<vmem>>, vector<1x32xf32>
    %3 = vector.shape_cast %2 : vector<1x32xf32> to vector<32xf32>
    %c0_4 = arith.constant 0 : index
    %c0_5 = arith.constant 0 : index
    %4 = vector.load %arg3[%c0_4, %c0_5] : memref<1x32xf32, #tpu.memory_space<vmem>>, vector<1x32xf32>
    %5 = vector.shape_cast %4 : vector<1x32xf32> to vector<32xf32>
    %cst = arith.constant dense<0.000000e+00> : vector<16xf32>
    %6 = vector.multi_reduction <add>, %1, %cst [1] : vector<16x32xf32> to vector<16xf32>
    %7 = vector.shape_cast %6 : vector<16xf32> to vector<16x1xf32>
    %cst_6 = arith.constant 3.200000e+01 : f32
    %8 = vector.broadcast %cst_6 : f32 to vector<16x1xf32>
    %9 = arith.divf %7, %8 : vector<16x1xf32>
    %10 = arith.mulf %1, %1 : vector<16x32xf32>
    %cst_7 = arith.constant dense<0.000000e+00> : vector<16xf32>
    %11 = vector.multi_reduction <add>, %10, %cst_7 [1] : vector<16x32xf32> to vector<16xf32>
    %12 = vector.shape_cast %11 : vector<16xf32> to vector<16x1xf32>
    %cst_8 = arith.constant 3.200000e+01 : f32
    %13 = vector.broadcast %cst_8 : f32 to vector<16x1xf32>
    %14 = arith.divf %12, %13 : vector<16x1xf32>
    %15 = arith.mulf %9, %9 : vector<16x1xf32>
    %16 = arith.subf %14, %15 : vector<16x1xf32>
    %17 = vector.broadcast %9 : vector<16x1xf32> to vector<16x32xf32>
    %18 = arith.subf %1, %17 : vector<16x32xf32>
    %cst_9 = arith.constant 9.99999974E-6 : f32
    %19 = vector.broadcast %cst_9 : f32 to vector<16x1xf32>
    %20 = arith.addf %16, %19 : vector<16x1xf32>
    %21 = math.rsqrt %20 : vector<16x1xf32>
    %22 = vector.broadcast %21 : vector<16x1xf32> to vector<16x32xf32>
    %23 = arith.mulf %18, %22 : vector<16x32xf32>
    %24 = vector.shape_cast %3 : vector<32xf32> to vector<1x32xf32>
    %25 = vector.broadcast %24 : vector<1x32xf32> to vector<16x32xf32>
    %26 = arith.mulf %23, %25 : vector<16x32xf32>
    %27 = vector.shape_cast %5 : vector<32xf32> to vector<1x32xf32>
    %28 = vector.broadcast %27 : vector<1x32xf32> to vector<16x32xf32>
    %29 = arith.addf %26, %28 : vector<16x32xf32>
    %c0_10 = arith.constant 0 : index
    %c0_11 = arith.constant 0 : index
    %30 = vector.load %arg4[%c0_10, %c0_11] : memref<32x96xf32, #tpu.memory_space<vmem>>, vector<32x96xf32>
    %cst_12 = arith.constant dense<0.000000e+00> : vector<16x96xf32>
    %31 = tpu.matmul %29, %30, %cst_12 {dimension_numbers = #tpu.dot_dimension_numbers<[1], [0], [0], [1], [0, 0, 1, 1], [], []>} : vector<16x32xf32>, vector<32x96xf32>, vector<16x96xf32> -> vector<16x96xf32>
    %c0_13 = arith.constant 0 : index
    %c0_14 = arith.constant 0 : index
    %32 = vector.load %arg5[%c0_13, %c0_14] : memref<1x96xf32, #tpu.memory_space<vmem>>, vector<1x96xf32>
    %33 = vector.shape_cast %32 : vector<1x96xf32> to vector<96xf32>
    %34 = vector.shape_cast %33 : vector<96xf32> to vector<1x96xf32>
    %35 = vector.broadcast %34 : vector<1x96xf32> to vector<16x96xf32>
    %36 = arith.addf %31, %35 : vector<16x96xf32>
    %c0_15 = arith.constant 0 : index
    %c0_16 = arith.constant 0 : index
    %37 = vector.load %arg15[%c0_15, %c0_16] : memref<16x96xf32, #tpu.memory_space<vmem>>, vector<16x96xf32>
    tpu.vector_store %arg15[%c0_15, %c0_16], %36 {strides = array<i32>} : memref<16x96xf32, #tpu.memory_space<vmem>>, vector<16x96xf32>,
    %c0_i32 = arith.constant 0 : i32
    %c2_i32 = arith.constant 2 : i32
    %38 = arith.addi %c0_i32, %c2_i32 : i32
    %c1_i32 = arith.constant 1 : i32
    scf.for %arg18 = %c0_i32 to %38 step %c1_i32  : i32 {
      %c1_i32_55 = arith.constant 1 : i32
      %105 = arith.muli %arg18, %c1_i32_55 : i32
      %c0_i32_56 = arith.constant 0 : i32
      %106 = arith.addi %c0_i32_56, %105 : i32
      %c8_i32 = arith.constant 8 : i32
      %107 = arith.muli %106, %c8_i32 : i32
      %108 = tpu.assume_multiple %107, 8 : i32
      %109 = arith.index_cast %108 : i32 to index
      %c0_57 = arith.constant 0 : index
      %110 = vector.load %arg15[%109, %c0_57] : memref<16x96xf32, #tpu.memory_space<vmem>>, vector<8x8xf32>
      %cst_58 = arith.constant 0.353553385 : f32
      %111 = vector.broadcast %cst_58 : f32 to vector<8x8xf32>
      %112 = arith.mulf %110, %111 : vector<8x8xf32>
      %113 = arith.index_cast %108 : i32 to index
      %c32 = arith.constant 32 : index
      %114 = vector.load %arg15[%113, %c32] : memref<16x96xf32, #tpu.memory_space<vmem>>, vector<8x8xf32>
      %115 = arith.index_cast %108 : i32 to index
      %c64 = arith.constant 64 : index
      %116 = vector.load %arg15[%115, %c64] : memref<16x96xf32, #tpu.memory_space<vmem>>, vector<8x8xf32>
      %cst_59 = arith.constant dense<0.000000e+00> : vector<8x8xf32>
      %117 = tpu.matmul %112, %114, %cst_59 {dimension_numbers = #tpu.dot_dimension_numbers<[1], [1], [0], [0], [0, 0, 1, 0], [], []>} : vector<8x8xf32>, vector<8x8xf32>, vector<8x8xf32> -> vector<8x8xf32>
      %cst_60 = arith.constant dense<0xFF800000> : vector<8xf32>
      %118 = vector.multi_reduction <maximumf>, %117, %cst_60 [1] : vector<8x8xf32> to vector<8xf32>
      %119 = vector.shape_cast %118 : vector<8xf32> to vector<8x1xf32>
      %120 = vector.broadcast %119 : vector<8x1xf32> to vector<8x8xf32>
      %121 = arith.subf %117, %120 : vector<8x8xf32>
      %122 = math.exp %121 : vector<8x8xf32>
      %cst_61 = arith.constant dense<0.000000e+00> : vector<8xf32>
      %123 = vector.multi_reduction <add>, %122, %cst_61 [1] : vector<8x8xf32> to vector<8xf32>
      %124 = vector.shape_cast %123 : vector<8xf32> to vector<8x1xf32>
      %125 = tpu.reciprocal %124 : vector<8x1xf32> -> vector<8x1xf32>
      %126 = vector.broadcast %125 : vector<8x1xf32> to vector<8x8xf32>
      %127 = arith.mulf %122, %126 : vector<8x8xf32>
      %cst_62 = arith.constant dense<0.000000e+00> : vector<8x8xf32>
      %128 = tpu.matmul %127, %116, %cst_62 {dimension_numbers = #tpu.dot_dimension_numbers<[1], [0], [0], [1], [0, 0, 1, 1], [], []>} : vector<8x8xf32>, vector<8x8xf32>, vector<8x8xf32> -> vector<8x8xf32>
      %c0_63 = arith.constant 0 : index
      %c0_64 = arith.constant 0 : index
      %129 = vector.load %arg16[%c0_63, %c0_64] : memref<8x32xf32, #tpu.memory_space<vmem>>, vector<8x8xf32>
      tpu.vector_store %arg16[%c0_63, %c0_64], %128 {strides = array<i32>} : memref<8x32xf32, #tpu.memory_space<vmem>>, vector<8x8xf32>,
      %130 = arith.index_cast %108 : i32 to index
      %c8 = arith.constant 8 : index
      %131 = vector.load %arg15[%130, %c8] : memref<16x96xf32, #tpu.memory_space<vmem>>, vector<8x8xf32>
      %cst_65 = arith.constant 0.353553385 : f32
      %132 = vector.broadcast %cst_65 : f32 to vector<8x8xf32>
      %133 = arith.mulf %131, %132 : vector<8x8xf32>
      %134 = arith.index_cast %108 : i32 to index
      %c40 = arith.constant 40 : index
      %135 = vector.load %arg15[%134, %c40] : memref<16x96xf32, #tpu.memory_space<vmem>>, vector<8x8xf32>
      %136 = arith.index_cast %108 : i32 to index
      %c72 = arith.constant 72 : index
      %137 = vector.load %arg15[%136, %c72] : memref<16x96xf32, #tpu.memory_space<vmem>>, vector<8x8xf32>
      %cst_66 = arith.constant dense<0.000000e+00> : vector<8x8xf32>
      %138 = tpu.matmul %133, %135, %cst_66 {dimension_numbers = #tpu.dot_dimension_numbers<[1], [1], [0], [0], [0, 0, 1, 0], [], []>} : vector<8x8xf32>, vector<8x8xf32>, vector<8x8xf32> -> vector<8x8xf32>
      %cst_67 = arith.constant dense<0xFF800000> : vector<8xf32>
      %139 = vector.multi_reduction <maximumf>, %138, %cst_67 [1] : vector<8x8xf32> to vector<8xf32>
      %140 = vector.shape_cast %139 : vector<8xf32> to vector<8x1xf32>
      %141 = vector.broadcast %140 : vector<8x1xf32> to vector<8x8xf32>
      %142 = arith.subf %138, %141 : vector<8x8xf32>
      %143 = math.exp %142 : vector<8x8xf32>
      %cst_68 = arith.constant dense<0.000000e+00> : vector<8xf32>
      %144 = vector.multi_reduction <add>, %143, %cst_68 [1] : vector<8x8xf32> to vector<8xf32>
      %145 = vector.shape_cast %144 : vector<8xf32> to vector<8x1xf32>
      %146 = tpu.reciprocal %145 : vector<8x1xf32> -> vector<8x1xf32>
      %147 = vector.broadcast %146 : vector<8x1xf32> to vector<8x8xf32>
      %148 = arith.mulf %143, %147 : vector<8x8xf32>
      %cst_69 = arith.constant dense<0.000000e+00> : vector<8x8xf32>
      %149 = tpu.matmul %148, %137, %cst_69 {dimension_numbers = #tpu.dot_dimension_numbers<[1], [0], [0], [1], [0, 0, 1, 1], [], []>} : vector<8x8xf32>, vector<8x8xf32>, vector<8x8xf32> -> vector<8x8xf32>
      %c0_70 = arith.constant 0 : index
      %c8_71 = arith.constant 8 : index
      %150 = vector.load %arg16[%c0_70, %c8_71] : memref<8x32xf32, #tpu.memory_space<vmem>>, vector<8x8xf32>
      tpu.vector_store %arg16[%c0_70, %c8_71], %149 {strides = array<i32>} : memref<8x32xf32, #tpu.memory_space<vmem>>, vector<8x8xf32>,
      %151 = arith.index_cast %108 : i32 to index
      %c16 = arith.constant 16 : index
      %152 = vector.load %arg15[%151, %c16] : memref<16x96xf32, #tpu.memory_space<vmem>>, vector<8x8xf32>
      %cst_72 = arith.constant 0.353553385 : f32
      %153 = vector.broadcast %cst_72 : f32 to vector<8x8xf32>
      %154 = arith.mulf %152, %153 : vector<8x8xf32>
      %155 = arith.index_cast %108 : i32 to index
      %c48 = arith.constant 48 : index
      %156 = vector.load %arg15[%155, %c48] : memref<16x96xf32, #tpu.memory_space<vmem>>, vector<8x8xf32>
      %157 = arith.index_cast %108 : i32 to index
      %c80 = arith.constant 80 : index
      %158 = vector.load %arg15[%157, %c80] : memref<16x96xf32, #tpu.memory_space<vmem>>, vector<8x8xf32>
      %cst_73 = arith.constant dense<0.000000e+00> : vector<8x8xf32>
      %159 = tpu.matmul %154, %156, %cst_73 {dimension_numbers = #tpu.dot_dimension_numbers<[1], [1], [0], [0], [0, 0, 1, 0], [], []>} : vector<8x8xf32>, vector<8x8xf32>, vector<8x8xf32> -> vector<8x8xf32>
      %cst_74 = arith.constant dense<0xFF800000> : vector<8xf32>
      %160 = vector.multi_reduction <maximumf>, %159, %cst_74 [1] : vector<8x8xf32> to vector<8xf32>
      %161 = vector.shape_cast %160 : vector<8xf32> to vector<8x1xf32>
      %162 = vector.broadcast %161 : vector<8x1xf32> to vector<8x8xf32>
      %163 = arith.subf %159, %162 : vector<8x8xf32>
      %164 = math.exp %163 : vector<8x8xf32>
      %cst_75 = arith.constant dense<0.000000e+00> : vector<8xf32>
      %165 = vector.multi_reduction <add>, %164, %cst_75 [1] : vector<8x8xf32> to vector<8xf32>
      %166 = vector.shape_cast %165 : vector<8xf32> to vector<8x1xf32>
      %167 = tpu.reciprocal %166 : vector<8x1xf32> -> vector<8x1xf32>
      %168 = vector.broadcast %167 : vector<8x1xf32> to vector<8x8xf32>
      %169 = arith.mulf %164, %168 : vector<8x8xf32>
      %cst_76 = arith.constant dense<0.000000e+00> : vector<8x8xf32>
      %170 = tpu.matmul %169, %158, %cst_76 {dimension_numbers = #tpu.dot_dimension_numbers<[1], [0], [0], [1], [0, 0, 1, 1], [], []>} : vector<8x8xf32>, vector<8x8xf32>, vector<8x8xf32> -> vector<8x8xf32>
      %c0_77 = arith.constant 0 : index
      %c16_78 = arith.constant 16 : index
      %171 = vector.load %arg16[%c0_77, %c16_78] : memref<8x32xf32, #tpu.memory_space<vmem>>, vector<8x8xf32>
      tpu.vector_store %arg16[%c0_77, %c16_78], %170 {strides = array<i32>} : memref<8x32xf32, #tpu.memory_space<vmem>>, vector<8x8xf32>,
      %172 = arith.index_cast %108 : i32 to index
      %c24 = arith.constant 24 : index
      %173 = vector.load %arg15[%172, %c24] : memref<16x96xf32, #tpu.memory_space<vmem>>, vector<8x8xf32>
      %cst_79 = arith.constant 0.353553385 : f32
      %174 = vector.broadcast %cst_79 : f32 to vector<8x8xf32>
      %175 = arith.mulf %173, %174 : vector<8x8xf32>
      %176 = arith.index_cast %108 : i32 to index
      %c56 = arith.constant 56 : index
      %177 = vector.load %arg15[%176, %c56] : memref<16x96xf32, #tpu.memory_space<vmem>>, vector<8x8xf32>
      %178 = arith.index_cast %108 : i32 to index
      %c88 = arith.constant 88 : index
      %179 = vector.load %arg15[%178, %c88] : memref<16x96xf32, #tpu.memory_space<vmem>>, vector<8x8xf32>
      %cst_80 = arith.constant dense<0.000000e+00> : vector<8x8xf32>
      %180 = tpu.matmul %175, %177, %cst_80 {dimension_numbers = #tpu.dot_dimension_numbers<[1], [1], [0], [0], [0, 0, 1, 0], [], []>} : vector<8x8xf32>, vector<8x8xf32>, vector<8x8xf32> -> vector<8x8xf32>
      %cst_81 = arith.constant dense<0xFF800000> : vector<8xf32>
      %181 = vector.multi_reduction <maximumf>, %180, %cst_81 [1] : vector<8x8xf32> to vector<8xf32>
      %182 = vector.shape_cast %181 : vector<8xf32> to vector<8x1xf32>
      %183 = vector.broadcast %182 : vector<8x1xf32> to vector<8x8xf32>
      %184 = arith.subf %180, %183 : vector<8x8xf32>
      %185 = math.exp %184 : vector<8x8xf32>
      %cst_82 = arith.constant dense<0.000000e+00> : vector<8xf32>
      %186 = vector.multi_reduction <add>, %185, %cst_82 [1] : vector<8x8xf32> to vector<8xf32>
      %187 = vector.shape_cast %186 : vector<8xf32> to vector<8x1xf32>
      %188 = tpu.reciprocal %187 : vector<8x1xf32> -> vector<8x1xf32>
      %189 = vector.broadcast %188 : vector<8x1xf32> to vector<8x8xf32>
      %190 = arith.mulf %185, %189 : vector<8x8xf32>
      %cst_83 = arith.constant dense<0.000000e+00> : vector<8x8xf32>
      %191 = tpu.matmul %190, %179, %cst_83 {dimension_numbers = #tpu.dot_dimension_numbers<[1], [0], [0], [1], [0, 0, 1, 1], [], []>} : vector<8x8xf32>, vector<8x8xf32>, vector<8x8xf32> -> vector<8x8xf32>
      %c0_84 = arith.constant 0 : index
      %c24_85 = arith.constant 24 : index
      %192 = vector.load %arg16[%c0_84, %c24_85] : memref<8x32xf32, #tpu.memory_space<vmem>>, vector<8x8xf32>
      tpu.vector_store %arg16[%c0_84, %c24_85], %191 {strides = array<i32>} : memref<8x32xf32, #tpu.memory_space<vmem>>, vector<8x8xf32>,
      %c0_86 = arith.constant 0 : index
      %c0_87 = arith.constant 0 : index
      %193 = vector.load %arg16[%c0_86, %c0_87] : memref<8x32xf32, #tpu.memory_space<vmem>>, vector<8x32xf32>
      %c0_88 = arith.constant 0 : index
      %c0_89 = arith.constant 0 : index
      %194 = vector.load %arg6[%c0_88, %c0_89] : memref<32x32xf32, #tpu.memory_space<vmem>>, vector<32x32xf32>
      %cst_90 = arith.constant dense<0.000000e+00> : vector<8x32xf32>
      %195 = tpu.matmul %193, %194, %cst_90 {dimension_numbers = #tpu.dot_dimension_numbers<[1], [0], [0], [1], [0, 0, 1, 1], [], []>} : vector<8x32xf32>, vector<32x32xf32>, vector<8x32xf32> -> vector<8x32xf32>
      %196 = arith.index_cast %108 : i32 to index
      %c0_91 = arith.constant 0 : index
      %197 = vector.load %arg17[%196, %c0_91] : memref<16x32xf32, #tpu.memory_space<vmem>>, vector<8x32xf32>
      tpu.vector_store %arg17[%196, %c0_91], %195 {strides = array<i32>} : memref<16x32xf32, #tpu.memory_space<vmem>>, vector<8x32xf32>,
    }
    %c2_i32_17 = arith.constant 2 : i32
    %c0_18 = arith.constant 0 : index
    %c0_19 = arith.constant 0 : index
    %c0_20 = arith.constant 0 : index
    %39 = vector.load %arg1[%c0_18, %c0_19, %c0_20] : memref<2x8x32xf32, #tpu.memory_space<vmem>>, vector<2x8x32xf32>
    %40 = vector.shape_cast %39 : vector<2x8x32xf32> to vector<16x32xf32>
    %c0_21 = arith.constant 0 : index
    %c0_22 = arith.constant 0 : index
    %41 = vector.load %arg17[%c0_21, %c0_22] : memref<16x32xf32, #tpu.memory_space<vmem>>, vector<16x32xf32>
    %42 = arith.addf %40, %41 : vector<16x32xf32>
    %c0_23 = arith.constant 0 : index
    %c0_24 = arith.constant 0 : index
    %43 = vector.load %arg7[%c0_23, %c0_24] : memref<1x32xf32, #tpu.memory_space<vmem>>, vector<1x32xf32>
    %44 = vector.shape_cast %43 : vector<1x32xf32> to vector<32xf32>
    %45 = vector.shape_cast %44 : vector<32xf32> to vector<1x32xf32>
    %46 = vector.broadcast %45 : vector<1x32xf32> to vector<16x32xf32>
    %47 = arith.addf %42, %46 : vector<16x32xf32>
    %c0_25 = arith.constant 0 : index
    %c0_26 = arith.constant 0 : index
    %48 = vector.load %arg17[%c0_25, %c0_26] : memref<16x32xf32, #tpu.memory_space<vmem>>, vector<16x32xf32>
    tpu.vector_store %arg17[%c0_25, %c0_26], %47 {strides = array<i32>} : memref<16x32xf32, #tpu.memory_space<vmem>>, vector<16x32xf32>,
    %c0_27 = arith.constant 0 : index
    %c0_28 = arith.constant 0 : index
    %49 = vector.load %arg8[%c0_27, %c0_28] : memref<1x32xf32, #tpu.memory_space<vmem>>, vector<1x32xf32>
    %50 = vector.shape_cast %49 : vector<1x32xf32> to vector<32xf32>
    %c0_29 = arith.constant 0 : index
    %c0_30 = arith.constant 0 : index
    %51 = vector.load %arg9[%c0_29, %c0_30] : memref<1x32xf32, #tpu.memory_space<vmem>>, vector<1x32xf32>
    %52 = vector.shape_cast %51 : vector<1x32xf32> to vector<32xf32>
    %cst_31 = arith.constant dense<0.000000e+00> : vector<16xf32>
    %53 = vector.multi_reduction <add>, %47, %cst_31 [1] : vector<16x32xf32> to vector<16xf32>
    %54 = vector.shape_cast %53 : vector<16xf32> to vector<16x1xf32>
    %cst_32 = arith.constant 3.200000e+01 : f32
    %55 = vector.broadcast %cst_32 : f32 to vector<16x1xf32>
    %56 = arith.divf %54, %55 : vector<16x1xf32>
    %57 = arith.mulf %47, %47 : vector<16x32xf32>
    %cst_33 = arith.constant dense<0.000000e+00> : vector<16xf32>
    %58 = vector.multi_reduction <add>, %57, %cst_33 [1] : vector<16x32xf32> to vector<16xf32>
    %59 = vector.shape_cast %58 : vector<16xf32> to vector<16x1xf32>
    %cst_34 = arith.constant 3.200000e+01 : f32
    %60 = vector.broadcast %cst_34 : f32 to vector<16x1xf32>
    %61 = arith.divf %59, %60 : vector<16x1xf32>
    %62 = arith.mulf %56, %56 : vector<16x1xf32>
    %63 = arith.subf %61, %62 : vector<16x1xf32>
    %64 = vector.broadcast %56 : vector<16x1xf32> to vector<16x32xf32>
    %65 = arith.subf %47, %64 : vector<16x32xf32>
    %cst_35 = arith.constant 9.99999974E-6 : f32
    %66 = vector.broadcast %cst_35 : f32 to vector<16x1xf32>
    %67 = arith.addf %63, %66 : vector<16x1xf32>
    %68 = math.rsqrt %67 : vector<16x1xf32>
    %69 = vector.broadcast %68 : vector<16x1xf32> to vector<16x32xf32>
    %70 = arith.mulf %65, %69 : vector<16x32xf32>
    %71 = vector.shape_cast %50 : vector<32xf32> to vector<1x32xf32>
    %72 = vector.broadcast %71 : vector<1x32xf32> to vector<16x32xf32>
    %73 = arith.mulf %70, %72 : vector<16x32xf32>
    %74 = vector.shape_cast %52 : vector<32xf32> to vector<1x32xf32>
    %75 = vector.broadcast %74 : vector<1x32xf32> to vector<16x32xf32>
    %76 = arith.addf %73, %75 : vector<16x32xf32>
    %cst_36 = arith.constant 0.000000e+00 : f32
    %77 = vector.broadcast %cst_36 : f32 to vector<16x32xf32>
    %c0_37 = arith.constant 0 : index
    %c0_38 = arith.constant 0 : index
    %78 = vector.load %arg10[%c0_37, %c0_38] : memref<32x128xf32, #tpu.memory_space<vmem>>, vector<32x128xf32>
    %cst_39 = arith.constant dense<0.000000e+00> : vector<16x128xf32>
    %79 = tpu.matmul %76, %78, %cst_39 {dimension_numbers = #tpu.dot_dimension_numbers<[1], [0], [0], [1], [0, 0, 1, 1], [], []>} : vector<16x32xf32>, vector<32x128xf32>, vector<16x128xf32> -> vector<16x128xf32>
    %c0_40 = arith.constant 0 : index
    %c0_41 = arith.constant 0 : index
    %80 = vector.load %arg11[%c0_40, %c0_41] : memref<1x128xf32, #tpu.memory_space<vmem>>, vector<1x128xf32>
    %81 = vector.shape_cast %80 : vector<1x128xf32> to vector<128xf32>
    %82 = vector.shape_cast %81 : vector<128xf32> to vector<1x128xf32>
    %83 = vector.broadcast %82 : vector<1x128xf32> to vector<16x128xf32>
    %84 = arith.addf %79, %83 : vector<16x128xf32>
    %cst_42 = arith.constant 5.000000e-01 : f32
    %85 = vector.broadcast %cst_42 : f32 to vector<16x128xf32>
    %86 = arith.mulf %85, %84 : vector<16x128xf32>
    %cst_43 = arith.constant 0.707106769 : f32
    %87 = vector.broadcast %cst_43 : f32 to vector<16x128xf32>
    %88 = arith.mulf %84, %87 : vector<16x128xf32>
    %89 = math.erf %88 : vector<16x128xf32>
    %cst_44 = arith.constant 1.000000e+00 : f32
    %90 = vector.broadcast %cst_44 : f32 to vector<16x128xf32>
    %91 = arith.addf %90, %89 : vector<16x128xf32>
    %92 = arith.mulf %86, %91 : vector<16x128xf32>
    %c0_45 = arith.constant 0 : index
    %c0_46 = arith.constant 0 : index
    %93 = vector.load %arg12[%c0_45, %c0_46] : memref<128x32xf32, #tpu.memory_space<vmem>>, vector<128x32xf32>
    %cst_47 = arith.constant dense<0.000000e+00> : vector<16x32xf32>
    %94 = tpu.matmul %92, %93, %cst_47 {dimension_numbers = #tpu.dot_dimension_numbers<[1], [0], [0], [1], [0, 0, 1, 1], [], []>} : vector<16x128xf32>, vector<128x32xf32>, vector<16x32xf32> -> vector<16x32xf32>
    %95 = arith.addf %77, %94 : vector<16x32xf32>
    %c0_48 = arith.constant 0 : index
    %c0_49 = arith.constant 0 : index
    %96 = vector.load %arg17[%c0_48, %c0_49] : memref<16x32xf32, #tpu.memory_space<vmem>>, vector<16x32xf32>
    %97 = arith.addf %96, %95 : vector<16x32xf32>
    %c0_50 = arith.constant 0 : index
    %c0_51 = arith.constant 0 : index
    %98 = vector.load %arg13[%c0_50, %c0_51] : memref<1x32xf32, #tpu.memory_space<vmem>>, vector<1x32xf32>
    %99 = vector.shape_cast %98 : vector<1x32xf32> to vector<32xf32>
    %100 = vector.shape_cast %99 : vector<32xf32> to vector<1x32xf32>
    %101 = vector.broadcast %100 : vector<1x32xf32> to vector<16x32xf32>
    %102 = arith.addf %97, %101 : vector<16x32xf32>
    %103 = vector.shape_cast %102 : vector<16x32xf32> to vector<2x8x32xf32>
    %c0_52 = arith.constant 0 : index
    %c0_53 = arith.constant 0 : index
    %c0_54 = arith.constant 0 : index
    %104 = vector.load %arg14[%c0_52, %c0_53, %c0_54] : memref<2x8x32xf32, #tpu.memory_space<vmem>>, vector<2x8x32xf32>
    tpu.vector_store %arg14[%c0_52, %c0_53, %c0_54], %103 {strides = array<i32>} : memref<2x8x32xf32, #tpu.memory_space<vmem>>, vector<2x8x32xf32>,
    return
  }
  func.func @transform_0(%arg0: i32) -> (i32, i32, i32) {
    %c0_i32 = arith.constant 0 : i32
    %c0_i32_0 = arith.constant 0 : i32
    %c0_i32_1 = arith.constant 0 : i32
    return %arg0, %c0_i32, %c0_i32_0 : i32, i32, i32
  }
  func.func @transform_1(%arg0: i32) -> (i32, i32) {
    %c0_i32 = arith.constant 0 : i32
    %c0_i32_0 = arith.constant 0 : i32
    %c0_i32_1 = arith.constant 0 : i32
    return %c0_i32, %c0_i32_0 : i32, i32
  }
  func.func @transform_2(%arg0: i32) -> (i32, i32) {
    %c0_i32 = arith.constant 0 : i32
    %c0_i32_0 = arith.constant 0 : i32
    %c0_i32_1 = arith.constant 0 : i32
    return %c0_i32, %c0_i32_0 : i32, i32
  }
  func.func @transform_3(%arg0: i32) -> (i32, i32) {
    %c0_i32 = arith.constant 0 : i32
    %c0_i32_0 = arith.constant 0 : i32
    %c0_i32_1 = arith.constant 0 : i32
    return %c0_i32, %c0_i32_0 : i32, i32
  }
  func.func @transform_4(%arg0: i32) -> (i32, i32) {
    %c0_i32 = arith.constant 0 : i32
    %c0_i32_0 = arith.constant 0 : i32
    %c0_i32_1 = arith.constant 0 : i32
    return %c0_i32, %c0_i32_0 : i32, i32
  }
  func.func @transform_5(%arg0: i32) -> (i32, i32) {
    %c0_i32 = arith.constant 0 : i32
    %c0_i32_0 = arith.constant 0 : i32
    %c0_i32_1 = arith.constant 0 : i32
    return %c0_i32, %c0_i32_0 : i32, i32
  }
  func.func @transform_6(%arg0: i32) -> (i32, i32) {
    %c0_i32 = arith.constant 0 : i32
    %c0_i32_0 = arith.constant 0 : i32
    %c0_i32_1 = arith.constant 0 : i32
    return %c0_i32, %c0_i32_0 : i32, i32
  }
  func.func @transform_7(%arg0: i32) -> (i32, i32) {
    %c0_i32 = arith.constant 0 : i32
    %c0_i32_0 = arith.constant 0 : i32
    %c0_i32_1 = arith.constant 0 : i32
    return %c0_i32, %c0_i32_0 : i32, i32
  }
  func.func @transform_8(%arg0: i32) -> (i32, i32) {
    %c0_i32 = arith.constant 0 : i32
    %c0_i32_0 = arith.constant 0 : i32
    %c0_i32_1 = arith.constant 0 : i32
    return %c0_i32, %c0_i32_0 : i32, i32
  }
  func.func @transform_9(%arg0: i32) -> (i32, i32) {
    %c0_i32 = arith.constant 0 : i32
    %c0_i32_0 = arith.constant 0 : i32
    %c0_i32_1 = arith.constant 0 : i32
    return %c0_i32, %c0_i32_0 : i32, i32
  }
  func.func @transform_10(%arg0: i32) -> (i32, i32) {
    %c0_i32 = arith.constant 0 : i32
    %c0_i32_0 = arith.constant 0 : i32
    %c0_i32_1 = arith.constant 0 : i32
    return %c0_i32, %c0_i32_0 : i32, i32
  }
  func.func @transform_11(%arg0: i32) -> (i32, i32) {
    %c0_i32 = arith.constant 0 : i32
    %c0_i32_0 = arith.constant 0 : i32
    %c0_i32_1 = arith.constant 0 : i32
    return %c0_i32, %c0_i32_0 : i32, i32
  }
  func.func @transform_12(%arg0: i32) -> (i32, i32) {
    %c0_i32 = arith.constant 0 : i32
    %c0_i32_0 = arith.constant 0 : i32
    %c0_i32_1 = arith.constant 0 : i32
    return %c0_i32, %c0_i32_0 : i32, i32
  }
  func.func @transform_13(%arg0: i32) -> (i32, i32, i32) {
    %c0_i32 = arith.constant 0 : i32
    %c0_i32_0 = arith.constant 0 : i32
    %c0_i32_1 = arith.constant 0 : i32
    return %arg0, %c0_i32, %c0_i32_0 : i32, i32, i32
  }
}

</mosaic_0001>

<bundles_post_ra>
// kernel: tpu_custom_call.1
= control target key start
LH: loop header
LB: loop body
LE: loop exit
PB: predicated region body
PF: predicated region fallthrough
CT: control target
= control target key end

     0   :  { %s2499_s0 = inlined_call_operand.vmem [shape: f32[4,8,32], index: 0, kind: input, shape index: {}]   ;;  %s2500_s1 = inlined_call_operand.vmem [shape: f32[1,32], index: 1, kind: input, shape index: {}]   ;;  %s2501_s2 = inlined_call_operand.vmem [shape: f32[1,32], index: 2, kind: input, shape index: {}]   ;;  %s2502_s3 = inlined_call_operand.vmem [shape: f32[32,96], index: 3, kind: input, shape index: {}]   ;;  %s2503_s4 = inlined_call_operand.vmem [shape: f32[1,96], index: 4, kind: input, shape index: {}]   ;;  %s2504_s5 = inlined_call_operand.vmem [shape: f32[32,32], index: 5, kind: input, shape index: {}]   ;;  %s2505_s6 = inlined_call_operand.vmem [shape: f32[1,32], index: 6, kind: input, shape index: {}]   ;;  %s2506_s7 = inlined_call_operand.vmem [shape: f32[1,32], index: 7, kind: input, shape index: {}]   ;;  %s2507_s8 = inlined_call_operand.vmem [shape: f32[1,32], index: 8, kind: input, shape index: {}]   ;;  %s2508_s9 = inlined_call_operand.vmem [shape: f32[32,128], index: 9, kind: input, shape index: {}]   ;;  %s2509_s10 = inlined_call_operand.vmem [shape: f32[1,128], index: 10, kind: input, shape index: {}]   ;;  %s2510_s11 = inlined_call_operand.vmem [shape: f32[128,32], index: 11, kind: input, shape index: {}]   ;;  %s2511_s12 = inlined_call_operand.vmem [shape: f32[1,32], index: 12, kind: input, shape index: {}]   ;;  %s2512_s13 = inlined_call_operand.hbm [shape: f32[4,8,32], index: 13, kind: output, shape index: {}]  }
   0x1   :  { %2515 = sst [smem:[#allocation9_spill]] %s2499_s0 }
   0x2   :  { %2516 = sst [smem:[#allocation10_spill]] %s2500_s1 }
   0x3   :  { %18 = vsyncpa [#allocation6], 0 }
   0x4   :  { %20 = vsyncpa [#allocation6 + $0x1], 0  ;;  %s2179_s25 = smov 0   ;;  %s2181_s26 = smov 0  }
   0x5   :  { %s2183_s27 = smov 0   ;;  %s2185_s28 = smov 0  }
   0x6 LB: > { %s2200_s29 = sadd.s32 4294967295, %s2084_s28   ;;  %s1729_s30 = sadd.s32 4294967294, %s2084_s28   ;;  %s2084_s28 = sphi %s2185_s28, %s2528_s28   ;;  %s2080_s27 = sphi %s2183_s27, %s2527_s27   ;;  %s2076_s26 = sphi %s2181_s26, %s2526_s26   ;;  %s2072_s25 = sphi %s2179_s25, %s2525_s25  }
   0x7   : > { %s2204_s14 = sadd.s32 1, %s2084_s28   ;;  %s311_s15 = sadd.s32 1, %s2080_s27 }
   0x8   : > { %s308_s16 = ssub.s32 %s2084_s28, %s2204_s14  ;;  %p321_p0 = scmp.ne.s32.totalorder %s2080_s27, %s2076_s26 }
   0x9   : > { %p309_p1 = scmp.eq.s32.totalorder %s308_s16, 0  ;;  %p322_p2 = scmp.eq.s32.totalorder %s2200_s29, 1 }
   0xa   : > { %p327_p3 = scmp.ne.s32.totalorder %s2076_s26, %s2072_s25  ;;  %p328_p4 = scmp.eq.s32.totalorder %s1729_s30, 1 }
   0xb   : > { %s2215_s17 = scalar_select %p309_p1, %s2080_s27, %s311_s15  }
   0xc   : > { %p2217_p5 = por %p322_p2, %p321_p0  ;;  %p2221_p6 = por %p328_p4, %p327_p3 }
   0xd   : > { %2517 = sst [smem:[#allocation8_spill]] %s2215_s17  ;;  %p1732_p7 = scmp.ge.s32.totalorder %s2084_s28, 1 }
   0xe   : > { %p391_p8 = scmp.lt.s32.totalorder %s2084_s28, 3 }
  0x10   : > { %p392_p9 = pnand %p1732_p7, %p391_p8 }
  0x11   : > { %s1734_s20 = sshll.u32 (!%p392_p9), %s2200_s29, 1  ;;  %s2520_s0 = sld [smem:[#allocation9_spill]] (!%p392_p9) }
  0x12   : > { %395 = sbr.rel (%p392_p9) target bundleno = 2206 (0x89e), region = 72  ;;  %p436_p10 = scmp.lt.s32.totalorder (!%p392_p9), %s1734_s20, 3 }
  0x13   : > { %s2513_s30 = sand.u32 (!%p392_p9), 1, %s2076_s26   ;;  %s2521_s1 = sld [smem:[#allocation10_spill]] (!%p392_p9) }
  0x14   : > { %s2248_s22 = sshll.u32 (!%p392_p9), %s2513_s30, 4 }
  0x15   : > { %s2268_s15 = scalar_lea.vmem (!%p392_p9), [#allocation5], %s2248_s22 }
  0x17   : > { %s2530_s20 = smov (!%p436_p10, %s1734_s20), 3  ;;  %vm446_vm0 = vcmask 261120   ;;  %v497_v8 = vld [vmem:[%s2502_s3 + $0x18] sm:$0xff]  ;;  %v496_v9 = vld [vmem:[%s2502_s3 + $0x10] sm:$0xff]  ;;  %v495_v10 = vld [vmem:[%s2502_s3 + $0x8] sm:$0xff]  ;;  %vm586_vm1 = vcmask 785408  }
  0x18   : > { %s1735_s21 = sshll.u32 %s2530_s20, 3  ;;  %1819 = vmatprep.subr.mxu0 %v497_v8  ;;  %v494_v11 = vld [vmem:[%s2502_s3] sm:$0xff] }
  0x19   : > { %s2231_s24 = scalar_lea.vmem %s2520_s0, %s1735_s21  ;;  %1820 = vmatpush3.msra.mxu0 %v497_v8  ;;  %v1736_v28 = vld [vmem:[%s2521_s1] ss:$0 sm:$0xff]  ;;  %s2270_s0 = smov 0  }
  0x1a   : > { %v442_v0 = vld [vmem:[%s2231_s24] sm:$0xff]  ;;  %v443_v1 = vld [vmem:[%s2231_s24 + $0x8] sm:$0xff]  ;;  %1821 = vmatprep.subr.mxu0 %v496_v9 }
  0x1b   : > { %v447_v2 = vsel %vm446_vm0, %v442_v0, 0.0  ;;  %v456_v3 = vmul.f32 %v442_v0, %v442_v0  ;;  %v457_v4 = vmul.f32 %v443_v1, %v443_v1  ;;  %v450_v6 = vsel %vm446_vm0, %v443_v1, 0.0  ;;  %1822 = vmatpush3.msra.mxu0 %v496_v9  ;;  %v1737_v30 = vld [vmem:[%s2501_s2] ss:$0 sm:$0xff] }
  0x1c   : > { %448 = vadd.xlane.f32.xlu0 %v447_v2  ;;  %1823 = vmatprep.subr.mxu0 %v495_v10  ;;  %v1738_v38 = vld [vmem:[%s2503_s4] ss:$0 sm:$0xff] }
  0x1d   : > { %v458_v5 = vsel %vm446_vm0, %v456_v3, 0.0  ;;  %v461_v7 = vsel %vm446_vm0, %v457_v4, 0.0  ;;  %1824 = vmatpush3.msra.mxu0 %v495_v10 }
  0x1e   : > { %459 = vadd.xlane.f32.xlu1 %v458_v5  ;;  %1825 = vmatprep.subr.mxu0 %v494_v11 }
  0x1f   : > { %1826 = vmatpush3.msra.mxu0 %v494_v11 }
  0x20   : > { %451 = vadd.xlane.f32.xlu0 %v450_v6 }
  0x22   : > { %462 = vadd.xlane.f32.xlu1 %v461_v7 }
  0xa5   : > { %v449_v12 = vpop.xlane.xlu0 %448 }
  0xa6   : > { %v454_v13 = vmul.f32 0.03125, %v449_v12 }
  0xa7   : > { %v460_v14 = vpop.xlane.xlu1 %459 }
  0xa8   : > { %v466_v15 = vmul.f32 %v454_v13, %v454_v13  ;;  %v464_v16 = vmul.f32 0.03125, %v460_v14  ;;  %v470_v26 = vsub.f32 %v442_v0, %v454_v13 }
  0xa9   : > { %v452_v17 = vpop.xlane.xlu0 %451 }
  0xaa   : > { %v468_v18 = vsub.f32 %v464_v16, %v466_v15  ;;  %v455_v19 = vmul.f32 0.03125, %v452_v17 }
  0xab   : > { %v463_v20 = vpop.xlane.xlu1 %462 }
  0xac   : > { %v472_v21 = vadd.f32 1e-05, %v468_v18  ;;  %v467_v22 = vmul.f32 %v455_v19, %v455_v19  ;;  %v465_v23 = vmul.f32 0.03125, %v463_v20  ;;  %v471_v31 = vsub.f32 %v443_v1, %v455_v19 }
  0xae   : > { %1992 = vrsqrt.f32 %v472_v21  ;;  %v469_v24 = vsub.f32 %v465_v23, %v467_v22 }
  0xb0   : > { %v473_v25 = vadd.f32 1e-05, %v469_v24 }
  0xb2   : > { %1994 = vrsqrt.f32 %v473_v25 }
  0xbb   : > { %v1993_v27 = vpop.eup %1992 }
  0xbc   : > { %v476_v29 = vmul.f32 %v1993_v27, %v470_v26 }
  0xbe   : > { %v484_v32 = vmul.f32 %v1736_v28, %v476_v29 }
  0xbf   : > { %v1995_v33 = vpop.eup %1994 }
  0xc0   : > { %v477_v34 = vmul.f32 %v1995_v33, %v471_v31  ;;  %v492_v35 = vadd.f32 %v1737_v30, %v484_v32 }
  0xc2   : > { %v485_v36 = vmul.f32 %v1736_v28, %v477_v34  ;;  %1827 = vmatprep.mubr.msk.f32.mxu0 %vm446_vm0, %v492_v35 }
  0xc4   : > { %v493_v37 = vadd.f32 %v1737_v30, %v485_v36 }
  0xc6   : > { %1828 = vmatmul.mubr.msk.f32.vlgmr.msra.gmra.mxu0 %vm446_vm0, %v493_v37 }
 0x186   : > { %v1829_v39 = vpop.f32.mrf.mxu0 }
 0x187   : > { %v583_v40 = vadd.f32 %v1829_v39, %v1738_v38 }
 0x188   : > { %v577_v41 = vpop.f32.mrf.mxu0 }
 0x189   : > { %588 = vst.msk [vmem:[#allocation2 + $0x8] sm:$0xff] %vm586_vm1, %v583_v40  ;;  %v578_v42 = vadd.f32 %v1738_v38, %v577_v41 }
 0x18b   : > { %587 = vst.msk [vmem:[#allocation2] sm:$0xff] %vm586_vm1, %v578_v42 }
 0x18c LB: >> { %v2090_v43 = vmov 0.0   ;;  %vm2091_vm2 = vmmov 0   ;;  %s2514_s17 = sshll.u32 %s2088_s0, 3  ;;  %s2092_s16 = smov 96   ;;  %vm602_vm3 = vcmask 64512   ;;  %v1295_v41 = vld [vmem:[%s2504_s5 + $0x18] sm:$0xff]  ;;  %s2088_s0 = sphi %s2270_s0, %s594_s0  }
 0x18d   : >> { %1830 = vmatprep.subr.mxu0 %v2090_v43  ;;  %1832 = vmatprep.mubr.msk.f32.mxu0 %vm2091_vm2, %v2090_v43  ;;  %s596_s22 = scalar_lea.vmem [#allocation2], %s2514_s17  ;;  %s2093_s20 = smov 120   ;;  %v1294_v42 = vld [vmem:[%s2504_s5 + $0x10] sm:$0xff]  ;;  %vm939_vm4 = vcmask 130112   ;;  %vm1114_vm5 = vcmask 195712   ;;  %vm1289_vm6 = vcmask 261312  }
 0x18e   : >> { %1840 = vmatprep.subr.mxu1 %v2090_v43  ;;  %1842 = vmatprep.mubr.msk.f32.mxu1 %vm2091_vm2, %v2090_v43  ;;  %s2094_s21 = smov 88   ;;  %s2095_s23 = smov 80  }
 0x18f   : >> { %s2096_s30 = smov 112   ;;  %s2097_s1 = smov 72  }
 0x190   : >> { %s2522_s17 = sshll.u32 %s2088_s0, 3  ;;  %s594_s0 = sadd.s32 1, %s2088_s0  }
 0x191   : >> { %p591_p11 = scmp.ge.s32.totalorder %s594_s0, 2  }
 0x192   : >> { %v2284_v44 = vld [vmem:[%s596_s22] sm:$0xff]  ;;  %s2098_s22 = smov 104  }
 0x193   : >> { %600 = vrot.lane.b32.xlu0 %v2284_v44, %s2092_s16  ;;  %v598_v45 = vmul.f32 0.35355338, %v2284_v44  ;;  %s2101_s16 = smov 48  }
 0x195   : >> { %769 = vrot.lane.b32.xlu1 %v598_v45, %s2093_s20  ;;  %s2102_s20 = smov 40  }
 0x197   : >> { %772 = vrot.lane.b32.xlu0 %v2284_v44, %s2094_s21  ;;  %s2103_s21 = smov 8  }
 0x199   : >> { %947 = vrot.lane.b32.xlu1 %v2284_v44, %s2095_s23  ;;  %s2104_s23 = smov 16  }
 0x19b   : >> { %944 = vrot.lane.b32.xlu0 %v598_v45, %s2096_s30  ;;  %s2100_s30 = smov 64  }
 0x19d   : >> { %1122 = vrot.lane.b32.xlu1 %v2284_v44, %s2097_s1  ;;  %s2099_s1 = smov 56  }
 0x19f   : >> { %1119 = vrot.lane.b32.xlu0 %v598_v45, %s2098_s22  ;;  %s2105_s22 = smov 24  }
 0x205   : >> { %v601_v46 = vpop.permute.xlu0 %600 }
 0x206   : >> { %1831 = vmatpush3.xpose.msk.msra.mxu0 %vm602_vm3, %v601_v46 }
 0x207   : >> { %v770_v47 = vpop.permute.xlu1 %769  ;;  %1835 = vmatprep.subr.mxu0 %v2090_v43 }
 0x209   : >> { %v773_v48 = vpop.permute.xlu0 %772  ;;  %1833 = vmatmul.mubr.msk.f32.vlgmr.msra.gmra.mxu0 %vm602_vm3, %v598_v45  ;;  %v1292_v45 = vld [vmem:[%s2504_s5] sm:$0xff] }
 0x20a   : >> { %1841 = vmatpush3.xpose.msk.msra.mxu1 %vm602_vm3, %v773_v48  ;;  %1837 = vmatprep.mubr.msk.f32.mxu0 %vm2091_vm2, %v2090_v43 }
 0x20b   : >> { %v948_v49 = vpop.permute.xlu1 %947  ;;  %1850 = vmatprep.subr.mxu1 %v2090_v43 }
 0x20d   : >> { %1843 = vmatmul.mubr.msk.f32.vlgmr.msra.gmra.mxu1 %vm602_vm3, %v770_v47  ;;  %v945_v50 = vpop.permute.xlu0 %944 }
 0x20e   : >> { %1851 = vmatpush3.xpose.msk.msra.mxu1 %vm602_vm3, %v948_v49  ;;  %1852 = vmatprep.mubr.msk.f32.mxu1 %vm2091_vm2, %v2090_v43 }
 0x20f   : >> { %v1123_v51 = vpop.permute.xlu1 %1122  ;;  %1860 = vmatprep.subr.mxu1 %v2090_v43 }
 0x211   : >> { %1853 = vmatmul.mubr.msk.f32.vlgmr.msra.gmra.mxu1 %vm602_vm3, %v945_v50  ;;  %v1120_v52 = vpop.permute.xlu0 %1119 }
 0x212   : >> { %1861 = vmatpush3.xpose.msk.msra.mxu1 %vm602_vm3, %v1123_v51  ;;  %1862 = vmatprep.mubr.msk.f32.mxu1 %vm2091_vm2, %v2090_v43 }
 0x213   : >> { %1870 = vmatprep.subr.mxu1 %v2090_v43 }
 0x215   : >> { %1863 = vmatmul.mubr.msk.f32.vlgmr.msra.gmra.mxu1 %vm602_vm3, %v1120_v52 }
 0x216   : >> { %1878 = vmatprep.mubr.msk.f32.mxu1 %vm2091_vm2, %v2090_v43  ;;  %1871 = vmatpush3.msra.mxu1 %v1295_v41  ;;  %v1548_v41 = vld [vmem:[%s2510_s11 + $0x50] sm:$0xff] (%p591_p11) }
 0x217   : >> { %1872 = vmatprep.subr.mxu1 %v2090_v43 }
 0x218   : >> { %1873 = vmatpush3.msra.mxu1 %v1294_v42  ;;  %v1547_v42 = vld [vmem:[%s2510_s11 + $0x48] sm:$0xff] (%p591_p11) }
 0x219   : >> { %1874 = vmatprep.subr.mxu1 %v2090_v43 }
 0x2c9   : >> { %v674_v53 = vpop.f32.mrf.mxu0 }
 0x2ca   : >> { %v678_v54 = vsel %vm602_vm3, %v674_v53, -inf }
 0x2cb   : >> { %679 = vmax.xlane.f32.xlu1 %v678_v54  ;;  %v1834_v55 = vpop.f32.mrf.mxu0 }
 0x2cc   : > { %v1371_v55 = vld [vmem:[%s2231_s24] sm:$0xff] (%p591_p11) }
 0x2cd   : >> { %v844_v56 = vpop.f32.mrf.mxu1 }
 0x2ce   : >> { %v848_v57 = vsel %vm602_vm3, %v844_v56, -inf }
 0x2cf   : >> { %849 = vmax.xlane.f32.xlu0 %v848_v57  ;;  %v1844_v58 = vpop.f32.mrf.mxu1  ;;  %v1755_v57 = vld [vmem:[%s2505_s6] ss:$0 sm:$0xff] (%p591_p11) }
 0x2d1   : >> { %v1019_v59 = vpop.f32.mrf.mxu1 }
 0x2d2   : >> { %v1023_v60 = vsel %vm602_vm3, %v1019_v59, -inf }
 0x2d3   : >> { %1024 = vmax.xlane.f32.xlu0 %v1023_v60  ;;  %v1854_v61 = vpop.f32.mrf.mxu1 }
 0x2d5   : >> { %v1194_v62 = vpop.f32.mrf.mxu1 }
 0x2d6   : >> { %v1198_v63 = vsel %vm602_vm3, %v1194_v62, -inf }
 0x2d7   : >> { %1199 = vmax.xlane.f32.xlu1 %v1198_v63  ;;  %v1864_v0 = vpop.f32.mrf.mxu1 }
 0x2e8   : >> { %859 = vrot.lane.b32.xlu1 %v2284_v44, %s2099_s1  ;;  %s1369_s1 = scalar_lea.vmem [#allocation4], %s2522_s17 }
 0x354   : >> { %v680_v1 = vpop.xlane.xlu1 %679 }
 0x355   : >> { %v681_v2 = vsub.f32 %v674_v53, %v680_v1 }
 0x357   : >> { %v682_v3 = vmul.f32 1.442695, %v681_v2 }
 0x358   : >> { %v850_v4 = vpop.xlane.xlu0 %849 }
 0x359   : >> { %1996 = vpow2.f32 %v682_v3  ;;  %v851_v5 = vsub.f32 %v844_v56, %v850_v4 }
 0x35b   : >> { %v852_v6 = vmul.f32 1.442695, %v851_v5 }
 0x35c   : >> { %v1025_v16 = vpop.xlane.xlu0 %1024 }
 0x35d   : >> { %1998 = vpow2.f32 %v852_v6  ;;  %v1026_v17 = vsub.f32 %v1019_v59, %v1025_v16  ;;  %v1372_v59 = vld [vmem:[%s2231_s24 + $0x8] sm:$0xff] (%p591_p11)  ;;  %v1439_v6 = vld [vmem:[%s2508_s9 + $0x18] sm:$0xff] (%p591_p11) }
 0x35f   : >> { %v1027_v18 = vmul.f32 1.442695, %v1026_v17 }
 0x360   : >> { %v1200_v7 = vpop.xlane.xlu1 %1199 }
 0x361   : >> { %v1201_v8 = vsub.f32 %v1194_v62, %v1200_v7  ;;  %v1438_v7 = vld [vmem:[%s2508_s9 + $0x10] sm:$0xff] (%p591_p11) }
 0x363   : >> { %v1202_v9 = vmul.f32 1.442695, %v1201_v8  ;;  %v1437_v8 = vld [vmem:[%s2508_s9 + $0x8] sm:$0xff] (%p591_p11) }
 0x364   : >> { %v860_v21 = vpop.permute.xlu1 %859 }
 0x365   : >> { %2000 = vpow2.f32 %v1202_v9  ;;  %v1436_v9 = vld [vmem:[%s2508_s9] sm:$0xff] (%p591_p11) }
 0x366   : >> { %v1997_v10 = vpop.eup %1996  ;;  %2002 = vpow2.f32 %v1027_v18 }
 0x367   : >> { %v684_v11 = vsel %vm602_vm3, %v1997_v10, 0.0 }
 0x368   : >> { %685 = vadd.xlane.f32.xlu0 %v684_v11  ;;  %v1552_v11 = vld [vmem:[%s2510_s11 + $0x70] sm:$0xff] (%p591_p11) }
 0x36a   : >> { %v1999_v12 = vpop.eup %1998 }
 0x36b   : >> { %v854_v13 = vsel %vm602_vm3, %v1999_v12, 0.0 }
 0x36c   : >> { %855 = vadd.xlane.f32.xlu1 %v854_v13 }
 0x372   : >> { %v2001_v14 = vpop.eup %2000 }
 0x373   : >> { %v1204_v15 = vsel %vm602_vm3, %v2001_v14, 0.0  ;;  %v2003_v19 = vpop.eup %2002 }
 0x374   : >> { %1205 = vadd.xlane.f32.xlu1 %v1204_v15  ;;  %v1029_v20 = vsel %vm602_vm3, %v2003_v19, 0.0 }
 0x37e   : >> { %689 = vrot.lane.b32.xlu0 %v2284_v44, %s2100_s30  ;;  %s1767_s30 = sshll.u32 (%p591_p11), %s2200_s29, 8  ;;  %s2523_s29 = sand.u32 (%p591_p11), 1, %s2076_s26  }
 0x385   : >> { %1034 = vrot.lane.b32.xlu1 %v2284_v44, %s2101_s16  ;;  %s1658_s16 = sshll.u32 (%p591_p11), %s2268_s15, 4  ;;  %s2451_s16 = int_to_ptr.vmem [resolvable:$true] %s1658_s16 }
 0x39d   : >> { %1030 = vadd.xlane.f32.xlu0 %v1029_v20 }
 0x3b3   : >> { %1209 = vrot.lane.b32.xlu0 %v2284_v44, %s2102_s20  ;;  %v1293_v44 = vld [vmem:[%s2504_s5 + $0x8] sm:$0xff]  ;;  %s2449_s20 = scalar_lea.hbm (%p591_p11), %s2512_s13, %s1767_s30 }
 0x3b4   : >> { %1875 = vmatpush3.msra.mxu1 %v1293_v44  ;;  %v1546_v44 = vld [vmem:[%s2510_s11 + $0x40] sm:$0xff] (%p591_p11) }
 0x3b5   : >> { %1876 = vmatprep.subr.mxu1 %v2090_v43 }
 0x3b6   : >> { %1877 = vmatpush3.msra.mxu1 %v1292_v45  ;;  %v1545_v45 = vld [vmem:[%s2510_s11 + $0x38] sm:$0xff] (%p591_p11) }
 0x3f1   : >> { %v686_v22 = vpop.xlane.xlu0 %685 }
 0x3f2   : >> { %2004 = vrcp.f32 %v686_v22 }
 0x3f5   : >> { %v690_v23 = vpop.permute.xlu0 %689  ;;  %v856_v24 = vpop.xlane.xlu1 %855 }
 0x3f6   : >> { %2006 = vrcp.f32 %v856_v24  ;;  %1836 = vmatpush3.msra.mxu0 %v690_v23 }
 0x3f7   : >> { %1845 = vmatprep.subr.mxu0 %v2090_v43 }
 0x3fd   : >> { %v1206_v26 = vpop.xlane.xlu1 %1205 }
 0x3ff   : >> { %v2005_v25 = vpop.eup %2004 }
 0x400   : >> { %v688_v27 = vmul.f32 %v2005_v25, %v1997_v10  ;;  %v1553_v10 = vld [vmem:[%s2510_s11 + $0x78] sm:$0xff] (%p591_p11) }
 0x401   : >> { %v1035_v30 = vpop.permute.xlu1 %1034  ;;  %1892 = vmatprep.subr.mxu1 (%p591_p11), %v1553_v10 }
 0x402   : >> { %1838 = vmatmul.mubr.msk.f32.vlgmr.msra.gmra.mxu0 %vm602_vm3, %v688_v27 }
 0x403   : >> { %v2007_v28 = vpop.eup %2006  ;;  %1846 = vmatpush3.msra.mxu0 %v860_v21  ;;  %1847 = vmatprep.mubr.msk.f32.mxu0 %vm2091_vm2, %v2090_v43 }
 0x404   : >> { %v858_v29 = vmul.f32 %v2007_v28, %v1999_v12  ;;  %1855 = vmatprep.subr.mxu0 %v2090_v43  ;;  %v1551_v12 = vld [vmem:[%s2510_s11 + $0x68] sm:$0xff] (%p591_p11) }
 0x406   : >> { %1848 = vmatmul.mubr.msk.f32.vlgmr.msra.gmra.mxu0 %vm602_vm3, %v858_v29  ;;  %v1756_v29 = vld [vmem:[%s2506_s7] ss:$0 sm:$0xff] (%p591_p11) }
 0x407   : >> { %1856 = vmatpush3.msra.mxu0 %v1035_v30  ;;  %1857 = vmatprep.mubr.msk.f32.mxu0 %vm2091_vm2, %v2090_v43 }
 0x408   : >> { %1865 = vmatprep.subr.mxu0 %v2090_v43 }
 0x426   : >> { %v1031_v31 = vpop.xlane.xlu0 %1030 }
 0x427   : >> { %2008 = vrcp.f32 %v1031_v31  ;;  %v1757_v31 = vld [vmem:[%s2507_s8] ss:$0 sm:$0xff] (%p591_p11) }
 0x428   : >> { %2010 = vrcp.f32 %v1206_v26 }
 0x42a   : >> { %v1210_v33 = vpop.permute.xlu0 %1209 }
 0x434   : >> { %v2009_v32 = vpop.eup %2008 }
 0x435   : >> { %v1033_v34 = vmul.f32 %v2009_v32, %v2003_v19  ;;  %v2011_v35 = vpop.eup %2010 }
 0x436   : >> { %v1208_v36 = vmul.f32 %v2011_v35, %v2001_v14 }
 0x437   : >> { %1858 = vmatmul.mubr.msk.f32.vlgmr.msra.gmra.mxu0 %vm602_vm3, %v1033_v34 }
 0x438   : >> { %1866 = vmatpush3.msra.mxu0 %v1210_v33  ;;  %1867 = vmatprep.mubr.msk.f32.mxu0 %vm2091_vm2, %v2090_v43 }
 0x439   : > { %1881 = vmatprep.subr.mxu0 (%p591_p11), %v1439_v6 }
 0x43b   : >> { %1868 = vmatmul.mubr.msk.f32.vlgmr.msra.gmra.mxu0 %vm602_vm3, %v1208_v36 }
 0x43c   : > { %1882 = vmatpush3.msra.mxu0 (%p591_p11), %v1439_v6 }
 0x43d   : > { %1883 = vmatprep.subr.mxu0 (%p591_p11), %v1438_v7 }
 0x43e   : > { %1884 = vmatpush3.msra.mxu0 (%p591_p11), %v1438_v7 }
 0x43f   : > { %1885 = vmatprep.subr.mxu0 (%p591_p11), %v1437_v8 }
 0x440   : > { %1886 = vmatpush3.msra.mxu0 (%p591_p11), %v1437_v8 }
 0x441   : > { %1887 = vmatprep.subr.mxu0 (%p591_p11), %v1436_v9 }
 0x442   : > { %1888 = vmatpush3.msra.mxu0 (%p591_p11), %v1436_v9 }
 0x4c2   : >> { %v761_v37 = vpop.f32.mrf.mxu0 }
 0x4c3   : >> { %765 = vst.msk [vmem:[#allocation3] sm:$0xff] %vm602_vm3, %v761_v37 }
 0x4c4   : >> { %v1839_v38 = vpop.f32.mrf.mxu0 }
 0x4c6   : >> { %v931_v39 = vpop.f32.mrf.mxu0 }
 0x4c7   : >> { %936 = vrot.lane.b32.xlu1 %v931_v39, %s2103_s21  ;;  %v1550_v39 = vld [vmem:[%s2510_s11 + $0x60] sm:$0xff] (%p591_p11)  ;;  %s2459_s21 = scalar_lea.sflag (%p591_p11), [#allocation6], %s2523_s29 }
 0x4c8   : >> { %v1849_v40 = vpop.f32.mrf.mxu0 }
 0x4c9   : > { %v1549_v40 = vld [vmem:[%s2510_s11 + $0x58] sm:$0xff] (%p591_p11) }
 0x4f7   : >> { %v1106_v46 = vpop.f32.mrf.mxu0 }
 0x4f8   : >> { %1111 = vrot.lane.b32.xlu0 %v1106_v46, %s2104_s23  ;;  %v1544_v46 = vld [vmem:[%s2510_s11 + $0x30] sm:$0xff] (%p591_p11)  ;;  %s2020_s23 = scalar_lea.vmem (%p591_p11), %s2451_s16, 256 }
 0x4f9   : >> { %v1859_v47 = vpop.f32.mrf.mxu0  ;;  %p2021_p12 = scmp.ne.s32.totalorder (%p591_p11), %s2451_s16, %s2020_s23 }
 0x4fa   : > { %v1543_v47 = vld [vmem:[%s2510_s11 + $0x28] sm:$0xff] (%p591_p11) }
 0x4fb   : >> { %v1281_v48 = vpop.f32.mrf.mxu0  ;;  %p2022_p13 = pnand (%p591_p11), %p2021_p12, %p2217_p5 }
 0x4fc   : >> { %1286 = vrot.lane.b32.xlu1 %v1281_v48, %s2105_s22  ;;  %v1542_v48 = vld [vmem:[%s2510_s11 + $0x20] sm:$0xff] (%p591_p11)  ;;  %s2106_s22 = smov (%p591_p11), [#allocation5]  }
 0x4fd   : >> { %v1869_v49 = vpop.f32.mrf.mxu0  ;;  %p2023_p0 = pneg (%p591_p11), %p2022_p13  ;;  %s2024_s17 = sshll.u32 (%p591_p11), %s2106_s22, 4  ;;  %s2025_s17 = int_to_ptr.vmem [resolvable:$false] %s2024_s17 }
 0x4fe   : > { %v1541_v49 = vld [vmem:[%s2510_s11 + $0x18] sm:$0xff] (%p591_p11)  ;;  %p2027_p1 = scmp.lt.s32.totalorder (%p591_p11), %s2451_s16, %s2025_s17 }
 0x539   : >> { %v937_v50 = vpop.permute.xlu1 %936 }
 0x53a   : >> { %940 = vst.msk [vmem:[#allocation3] sm:$0xff] %vm939_vm4, %v937_v50  ;;  %v1540_v50 = vld [vmem:[%s2510_s11 + $0x10] sm:$0xff] (%p591_p11) }
 0x56a   : >> { %v1112_v51 = vpop.permute.xlu0 %1111 }
 0x56b   : >> { %1115 = vst.msk [vmem:[#allocation3] sm:$0xff] %vm1114_vm5, %v1112_v51  ;;  %v1539_v51 = vld [vmem:[%s2510_s11 + $0x8] sm:$0xff] (%p591_p11) }
 0x56e   : >> { %v1287_v52 = vpop.permute.xlu1 %1286 }
 0x56f   : >> { %1290 = vst.msk [vmem:[#allocation3] sm:$0xff] %vm1289_vm6, %v1287_v52  ;;  %v1538_v52 = vld [vmem:[%s2510_s11] sm:$0xff] (%p591_p11) }
 0x576   : >> { %v1291_v43 = vld [vmem:[#allocation3] sm:$0xff] }
 0x577   : >> { %1879 = vmatmul.mubr.msk.f32.vlgmr.msra.gmra.mxu1 %vm446_vm0, %v1291_v43  ;;  %v1758_v43 = vld [vmem:[%s2509_s10] ss:$0 sm:$0xff] (%p591_p11) }
 0x578   : > { %1893 = vmatpush3.msra.mxu1 (%p591_p11), %v1553_v10 }
 0x579   : > { %1894 = vmatprep.subr.mxu1 (%p591_p11), %v1552_v11 }
 0x57a   : > { %1895 = vmatpush3.msra.mxu1 (%p591_p11), %v1552_v11 }
 0x57b   : > { %1896 = vmatprep.subr.mxu1 (%p591_p11), %v1551_v12 }
 0x57c   : > { %1897 = vmatpush3.msra.mxu1 (%p591_p11), %v1551_v12 }
 0x57d   : > { %1898 = vmatprep.subr.mxu1 (%p591_p11), %v1550_v39 }
 0x57e   : > { %1899 = vmatpush3.msra.mxu1 (%p591_p11), %v1550_v39 }
 0x57f   : > { %1900 = vmatprep.subr.mxu1 (%p591_p11), %v1549_v40 }
 0x580   : > { %1901 = vmatpush3.msra.mxu1 (%p591_p11), %v1549_v40 }
 0x581   : > { %1902 = vmatprep.subr.mxu1 (%p591_p11), %v1548_v41 }
 0x582   : > { %1903 = vmatpush3.msra.mxu1 (%p591_p11), %v1548_v41 }
 0x583   : > { %1904 = vmatprep.subr.mxu1 (%p591_p11), %v1547_v42 }
 0x584   : > { %1905 = vmatpush3.msra.mxu1 (%p591_p11), %v1547_v42 }
 0x585   : > { %1906 = vmatprep.subr.mxu1 (%p591_p11), %v1546_v44 }
 0x586   : > { %1907 = vmatpush3.msra.mxu1 (%p591_p11), %v1546_v44 }
 0x587   : > { %1908 = vmatprep.subr.mxu1 (%p591_p11), %v1545_v45 }
 0x588   : > { %1909 = vmatpush3.msra.mxu1 (%p591_p11), %v1545_v45 }
 0x589   : > { %1910 = vmatprep.subr.mxu1 (%p591_p11), %v1544_v46 }
 0x58a   : > { %1911 = vmatpush3.msra.mxu1 (%p591_p11), %v1544_v46 }
 0x58b   : > { %1912 = vmatprep.subr.mxu1 (%p591_p11), %v1543_v47 }
 0x58c   : > { %1913 = vmatpush3.msra.mxu1 (%p591_p11), %v1543_v47 }
 0x58d   : > { %1914 = vmatprep.subr.mxu1 (%p591_p11), %v1542_v48 }
 0x58e   : > { %1915 = vmatpush3.msra.mxu1 (%p591_p11), %v1542_v48 }
 0x58f   : > { %1916 = vmatprep.subr.mxu1 (%p591_p11), %v1541_v49 }
 0x590   : > { %1917 = vmatpush3.msra.mxu1 (%p591_p11), %v1541_v49 }
 0x591   : > { %1918 = vmatprep.subr.mxu1 (%p591_p11), %v1540_v50 }
 0x592   : > { %1919 = vmatpush3.msra.mxu1 (%p591_p11), %v1540_v50 }
 0x593   : > { %1920 = vmatprep.subr.mxu1 (%p591_p11), %v1539_v51 }
 0x594   : > { %1921 = vmatpush3.msra.mxu1 (%p591_p11), %v1539_v51 }
 0x595   : > { %1922 = vmatprep.subr.mxu1 (%p591_p11), %v1538_v52 }
 0x596   : > { %1923 = vmatpush3.msra.mxu1 (%p591_p11), %v1538_v52 }
 0x635   : > { %593 = sbr.rel (!%p591_p11) target bundleno = 396 (0x18c), region = 116 }
 0x637   : >> { %v1365_v53 = vpop.f32.mrf.mxu1 }
 0x638   : >> { %1370 = vst.msk [vmem:[%s1369_s1] sm:$0xff] %vm446_vm0, %v1365_v53  ;;  %s2026_s1 = scalar_lea.vmem (%p591_p11), %s2025_s17, 512 }
 0x639   : >> { %v1880_v54 = vpop.f32.mrf.mxu1  ;;  %p2028_p2 = scmp.lt.s32.totalorder (%p591_p11), %s2026_s1, %s2020_s23 }
 0x63b   : > { %p2029_p3 = por %p2028_p2, %p2027_p1 }
 0x63d   : > { %p2030_p4 = pnand %p2029_p3, %p2023_p0 }
 0x63f   : > { %v1373_v56 = vld [vmem:[#allocation4] sm:$0xff]  ;;  %v1374_v60 = vld [vmem:[#allocation4 + $0x8] sm:$0xff] }
 0x640   : > { %v1375_v58 = vadd.f32 %v1373_v56, %v1371_v55  ;;  %v1376_v61 = vadd.f32 %v1374_v60, %v1372_v59 }
 0x642   : > { %v1384_v62 = vadd.f32 %v1755_v57, %v1375_v58  ;;  %v1385_v63 = vadd.f32 %v1755_v57, %v1376_v61 }
 0x644   : > { %v1390_v0 = vsel %vm446_vm0, %v1384_v62, 0.0  ;;  %1386 = vst.msk [vmem:[#allocation4] sm:$0xff] %vm446_vm0, %v1384_v62  ;;  %v1398_v1 = vmul.f32 %v1384_v62, %v1384_v62  ;;  %1387 = vst.msk [vmem:[#allocation4 + $0x8] sm:$0xff] %vm446_vm0, %v1385_v63  ;;  %v1399_v2 = vmul.f32 %v1385_v63, %v1385_v63  ;;  %v1393_v4 = vsel %vm446_vm0, %v1385_v63, 0.0 }
 0x645   : > { %1391 = vadd.xlane.f32.xlu0 %v1390_v0 }
 0x646   : > { %v1400_v3 = vsel %vm446_vm0, %v1398_v1, 0.0  ;;  %v1403_v5 = vsel %vm446_vm0, %v1399_v2, 0.0 }
 0x647   : > { %1401 = vadd.xlane.f32.xlu1 %v1400_v3 }
 0x649   : > { %1394 = vadd.xlane.f32.xlu0 %v1393_v4 }
 0x64b   : > { %1404 = vadd.xlane.f32.xlu1 %v1403_v5  ;;  %v1630_v3 = vld [vmem:[#allocation4 + $0x8] sm:$0xff]  ;;  %v1629_v6 = vld [vmem:[#allocation4] sm:$0xff] }
 0x64c   : > { %v1761_v5 = vld [vmem:[%s2511_s12] ss:$0 sm:$0xff] }
 0x6ce   : > { %v1392_v13 = vpop.xlane.xlu0 %1391 }
 0x6cf   : > { %v1396_v14 = vmul.f32 0.03125, %v1392_v13 }
 0x6d0   : > { %v1402_v15 = vpop.xlane.xlu1 %1401 }
 0x6d1   : > { %v1408_v16 = vmul.f32 %v1396_v14, %v1396_v14  ;;  %v1406_v17 = vmul.f32 0.03125, %v1402_v15  ;;  %v1412_v27 = vsub.f32 %v1384_v62, %v1396_v14 }
 0x6d2   : > { %v1395_v18 = vpop.xlane.xlu0 %1394 }
 0x6d3   : > { %v1410_v19 = vsub.f32 %v1406_v17, %v1408_v16  ;;  %v1397_v20 = vmul.f32 0.03125, %v1395_v18 }
 0x6d4   : > { %v1405_v21 = vpop.xlane.xlu1 %1404 }
 0x6d5   : > { %v1414_v22 = vadd.f32 1e-05, %v1410_v19  ;;  %v1409_v23 = vmul.f32 %v1397_v20, %v1397_v20  ;;  %v1407_v24 = vmul.f32 0.03125, %v1405_v21  ;;  %v1413_v32 = vsub.f32 %v1385_v63, %v1397_v20 }
 0x6d7   : > { %2012 = vrsqrt.f32 %v1414_v22  ;;  %v1411_v25 = vsub.f32 %v1407_v24, %v1409_v23 }
 0x6d9   : > { %v1415_v26 = vadd.f32 1e-05, %v1411_v25 }
 0x6db   : > { %2014 = vrsqrt.f32 %v1415_v26 }
 0x6e4   : > { %v2013_v28 = vpop.eup %2012 }
 0x6e5   : > { %v1418_v30 = vmul.f32 %v2013_v28, %v1412_v27 }
 0x6e7   : > { %v1426_v33 = vmul.f32 %v1756_v29, %v1418_v30 }
 0x6e8   : > { %v2015_v34 = vpop.eup %2014 }
 0x6e9   : > { %v1419_v35 = vmul.f32 %v2015_v34, %v1413_v32  ;;  %v1434_v36 = vadd.f32 %v1757_v31, %v1426_v33 }
 0x6eb   : > { %v1427_v37 = vmul.f32 %v1756_v29, %v1419_v35  ;;  %1889 = vmatprep.mubr.msk.f32.mxu0 %vm446_vm0, %v1434_v36 }
 0x6ed   : > { %v1435_v38 = vadd.f32 %v1757_v31, %v1427_v37 }
 0x6ef   : > { %1890 = vmatmul.mubr.msk.f32.vlgmr.msra.gmra.mxu0 %vm446_vm0, %v1435_v38 }
 0x7af   : > { %v1891_v53 = vpop.f32.mrf.mxu0 }
 0x7b0   : > { %v1525_v54 = vadd.f32 %v1891_v53, %v1758_v43 }
 0x7b1   : > { %v1519_v55 = vpop.f32.mrf.mxu0 }
 0x7b2   : > { %v1531_v56 = vmul.f32 0.70710677, %v1525_v54  ;;  %v1520_v57 = vadd.f32 %v1758_v43, %v1519_v55  ;;  %v1529_v0 = vmul.f32 0.5, %v1525_v54 }
 0x7b4   : > { %2016 = verf.f32 %v1531_v56  ;;  %v1530_v58 = vmul.f32 0.70710677, %v1520_v57  ;;  %v1528_v62 = vmul.f32 0.5, %v1520_v57 }
 0x7b6   : > { %2018 = verf.f32 %v1530_v58 }
 0x7c1   : > { %v2017_v59 = vpop.eup %2016 }
 0x7c2   : > { %v1535_v61 = vadd.f32 1.0, %v2017_v59 }
 0x7c3   : > { %v2019_v60 = vpop.eup %2018 }
 0x7c4   : > { %v1534_v63 = vadd.f32 1.0, %v2019_v60  ;;  %v1537_v2 = vmul.f32 %v1535_v61, %v1529_v0 }
 0x7c6   : > { %v1536_v1 = vmul.f32 %v1534_v63, %v1528_v62 }
 0x7c8   : > { %1924 = vmatprep.mubr.f32.mxu1 %v1536_v1 }
 0x7c9   : > { %1925 = vmatmul.mubr.f32.vlgmr.msra.gmra.mxu1 %v1537_v2 }
 0x889   : > { %v1926_v4 = vpop.f32.mrf.mxu1 }
 0x88a   : > { %v1632_v7 = vadd.f32 %v1926_v4, %v1630_v3 }
 0x88b   : > { %v1620_v8 = vpop.f32.mrf.mxu1 }
 0x88c   : > { %v1641_v9 = vadd.f32 %v1761_v5, %v1632_v7  ;;  %v1631_v10 = vadd.f32 %v1629_v6, %v1620_v8 }
 0x88e   : > { %1643 = vst.msk [vmem:[%s2268_s15 + $0x8] sm:$0xff] %vm446_vm0, %v1641_v9  ;;  %v1640_v11 = vadd.f32 %v1761_v5, %v1631_v10 }
 0x890   : > { %1642 = vst.msk [vmem:[%s2268_s15] sm:$0xff] %vm446_vm0, %v1640_v11 }
 0x891   : > { %2033 = shalt.err (!%p2030_p4)
}
 0x892   : > { %s2034_s15 = scalar_lea.hbm %s2449_s20, 256  ;;  %s2038_s0 = scalar_lea.hbm %s2512_s13, 512 }
 0x893   : > { %p2035_p7 = scmp.ne.s32.totalorder %s2449_s20, %s2034_s15  ;;  %p2039_p10 = scmp.lt.s32.totalorder %s2449_s20, %s2512_s13 }
 0x894   : > { %p2040_p11 = scmp.lt.s32.totalorder %s2038_s0, %s2034_s15 }
 0x895   : > { %p2036_p8 = pnand %p2035_p7, %p2217_p5 }
 0x896   : > { %p2041_p12 = por %p2040_p11, %p2039_p10 }
 0x897   : > { %p2037_p9 = pneg %p2036_p8 }
 0x899   : > { %p2042_p13 = pnand %p2041_p12, %p2037_p9 }
 0x89b   : > { %2045 = shalt.err (!%p2042_p13)
}
 0x89c   : > { %s2107_s23 = smov 128   ;;  %s2108_s17 = smov 8  }
 0x89d   : > { %1927 = dma.vmem_to_hbm [thread:$0]  (%p2217_p5), %s2451_s16, 256, %s2449_s20, %s2459_s21, %s2107_s23, %s2107_s23, %s2108_s17  }
 0x89e PF: > { %p1933_p0 = scmp.ge.s32.totalorder %s2084_s28, 2  ;;  %s1673_s1 = sand.u32 1, %s2072_s25  }
 0x89f   : > { %s1674_s15 = scalar_lea.sflag [#allocation6], %s1673_s1 }
 0x8a0   : > { %p1930_p1 = pnand %p1933_p0, %p2221_p6 }
 0x8a2   : > { %p1931_p2 = pneg %p1930_p1 }
 0x8a4   : > { %2067 = dma.done.wait (%p1931_p2), %s1674_s15, 256  }
 0x8a5   : > { %2069 = vsyncadd (%p1931_p2), %s1674_s15, 4294967040  ;;  %s2524_s30 = sld [smem:[#allocation8_spill]]  ;;  %p23_p3 = scmp.ge.s32.totalorder %s2204_s14, 4  }
 0x8a6   : > { %s2525_s25 = smov %s2076_s26  ;;  %s2526_s26 = smov %s2080_s27 }
 0x8a7   : > { %s2528_s28 = smov %s2204_s14  ;;  %25 = sbr.rel (!%p23_p3) target bundleno = 6 (0x6), region = 127 }
 0x8ab   : > { %s2527_s27 = smov %s2524_s30 }
 0x8ac   :  { %1679 = vsyncpa [#allocation6], 1 }
 0x8ad   :  { %1681 = vsyncpa [#allocation6 + $0x1], 1 }

</bundles_post_ra>
